<compile_context>
chip_gen: v5e
topology: v5e:2x2
jax: 0.10.0
libtpu: 0.0.40
codegen_flags: <defaults>
</compile_context>

<pallas_src>
import jax
import jax.numpy as jnp
from jax.experimental import pallas as pl
from jax.experimental.pallas import tpu as pltpu

LN_EPS = 1e-6   # timm ViT final LayerNorm eps
BN_EPS = 1e-5   # nn.BatchNorm1d default eps


# --------------------------------------------------------------------------------------
# Kernel: per-batch-tile token mixing + fused LayerNorm + per-attribute heads.
#   grid = (batch // tile_b,)  -- "parallel" axis (pipelining + dual-TC sharding).
#   y[a, d]  = (W_img @ img_b)[a, d] + base[a, d]                (f32 accumulate on MXU)
#   logit[a] = rsqrt(var_a + eps) * (sum_d y*w_eff - mu_a * sum_w) + c       (fused LN+head)
# --------------------------------------------------------------------------------------
def _token_mix_kernel(base_ref, w_img_ref, w_eff_ref, sum_w_ref, c_ref, img_ref, out_ref):
    # batch-invariant loads hoisted out of the tile loop
    base  = base_ref[...]        # (attr, dim)  f32
    w_img = w_img_ref[...]       # (attr, tokens)
    w_eff = w_eff_ref[...]       # (attr, dim)  f32  (= ln_g * w_attr)
    sum_w = sum_w_ref[...]       # (attr, 1)    f32
    c     = c_ref[...]           # (attr, 1)    f32  (= sum(ln_b*w_attr) + b_attr)

    tile_b = img_ref.shape[0]
    inv_d = 1.0 / base.shape[-1]

    cols = []
    for i in range(tile_b):      # small static loop; live state per iter is tiny after LN fusion
        # token-mixing GEMM: (attr, tokens) @ (tokens, dim) -> (attr, dim), f32 accumulate
        y = jnp.dot(w_img, img_ref[i], preferred_element_type=jnp.float32) + base
        # fused LayerNorm + Linear(dim->1) head: three row reductions, no y_n materialized
        s1 = jnp.sum(y, axis=-1, keepdims=True)            # (attr, 1)
        s2 = jnp.sum(y * y, axis=-1, keepdims=True)
        sw = jnp.sum(y * w_eff, axis=-1, keepdims=True)
        mu = s1 * inv_d
        var = s2 * inv_d - mu * mu
        cols.append(jax.lax.rsqrt(var + LN_EPS) * (sw - mu * sum_w) + c)   # (attr, 1)

    stacked = cols[0] if tile_b == 1 else jnp.concatenate(cols, axis=-1)   # (attr, tile_b)
    out_ref[0] = stacked.astype(out_ref.dtype)              # single store per grid step


# --------------------------------------------------------------------------------------
# Wrapper = module forward (use_div=False -> final_similarity is None)
# --------------------------------------------------------------------------------------
def transformer_classifier_forward(text_features, clip_image_features, params,
                                   *, tile_b=None, compute_dtype=jnp.bfloat16,
                                   image_buffers=2):
    """Returns (bn_logits, final_similarity); final_similarity is None (use_div=False).

    compute_dtype: dtype for the HBM-resident image features and W_img (bf16 default
                   halves HBM traffic on this memory-bound kernel; accumulation is f32).
    tile_b:        batch items per grid step; None -> auto (<=8 bf16 / <=4 f32).
    image_buffers: >2 enables pl.Buffered deeper pipelining on the image BlockSpec.
    """
    batch, img_tokens, dim = clip_image_features.shape
    attr_num = text_features.shape[0]
    f32 = jnp.float32

    # ---- auto tile size: biggest divisor of batch up to the per-dtype target ----
    img_itemsize = jnp.dtype(compute_dtype).itemsize if compute_dtype is not None else 4
    if tile_b is None:
        target = 8 if img_itemsize < 4 else 4
        tile_b = 1
        for t in range(min(batch, target), 0, -1):
            if batch % t == 0:
                tile_b = t
                break
    assert batch % tile_b == 0, "tile_b must divide batch"
    n_tiles = batch // tile_b

    # ---- batch-invariant prep in plain jnp (tiny; XLA fuses it, no extra pallas_call) ----
    text  = text_features.astype(f32)
    w_we  = params["w_we"].astype(f32)
    b_we  = params["b_we"].astype(f32)
    w_lin = params["w_lin"].astype(f32)
    b_lin = params["b_lin"].astype(f32)
    ln_g  = params["ln_g"].astype(f32)
    ln_b  = params["ln_b"].astype(f32)
    w_attr = params["w_attr"].astype(f32)
    b_attr = params["b_attr"].astype(f32)

    textual = text @ w_we.T + b_we                         # (attr, dim)    word_embed
    w_txt   = w_lin[:, :attr_num]                          # (attr, attr)   batch-invariant part
    w_img   = w_lin[:, attr_num:]                          # (attr, tokens)
    base    = w_txt @ textual + b_lin.T                    # (attr, dim)

    # fused-LayerNorm head constants
    w_eff  = ln_g * w_attr                                 # (attr, dim)
    sum_w  = jnp.sum(w_eff, axis=-1, keepdims=True)        # (attr, 1)
    c      = jnp.sum(ln_b * w_attr, axis=-1, keepdims=True) + b_attr.T   # (attr, 1)

    img = clip_image_features
    if compute_dtype is not None:
        img = img.astype(compute_dtype)
        w_img = w_img.astype(compute_dtype)

    # ---- VMEM sizing: raise the scoped limit only if the pipelined blocks need it ----
    n_buf = max(2, image_buffers)
    img_block_bytes = tile_b * img_tokens * dim * img_itemsize
    const_bytes = (2 * attr_num * dim * 4                  # base, w_eff
                   + attr_num * img_tokens * img_itemsize  # w_img
                   + 4 * attr_num * 4                      # sum_w, c (padded)
                   + attr_num * tile_b * 4)                # out block
    vmem_need = n_buf * img_block_bytes + 2 * const_bytes + (2 << 20)
    vmem_limit = int(min(vmem_need + (2 << 20), 48 << 20)) if vmem_need > (16 << 20) else None

    # ---- image BlockSpec (optionally deeper-buffered) ----
    img_index_map = lambda b: (b, 0, 0)
    if image_buffers > 2:
        img_spec = pl.BlockSpec((tile_b, img_tokens, dim), img_index_map,
                                pipeline_mode=pl.Buffered(image_buffers))
    else:
        img_spec = pl.BlockSpec((tile_b, img_tokens, dim), img_index_map)

    cost = pl.CostEstimate(
        flops=int(2 * batch * attr_num * img_tokens * dim + 6 * batch * attr_num * dim),
        transcendentals=int(batch * attr_num),
        bytes_accessed=int(batch * img_tokens * dim * img_itemsize
                           + const_bytes + batch * attr_num * 4),
    )

    # ---- the single batch-tiled kernel ----
    out3 = pl.pallas_call(
        _token_mix_kernel,
        out_shape=jax.ShapeDtypeStruct((n_tiles, attr_num, tile_b), f32),
        grid=(n_tiles,),
        in_specs=[
            pl.BlockSpec((attr_num, dim), lambda b: (0, 0)),            # base
            pl.BlockSpec((attr_num, img_tokens), lambda b: (0, 0)),     # W_img
            pl.BlockSpec((attr_num, dim), lambda b: (0, 0)),            # w_eff
            pl.BlockSpec((attr_num, 1), lambda b: (0, 0)),              # sum_w
            pl.BlockSpec((attr_num, 1), lambda b: (0, 0)),              # c
            img_spec,                                                   # image tile (streamed)
        ],
        out_specs=pl.BlockSpec((1, attr_num, tile_b), lambda b: (b, 0, 0)),
        compiler_params=pltpu.CompilerParams(
            dimension_semantics=("parallel",),
            vmem_limit_bytes=vmem_limit),
        cost_estimate=cost,
    )(base, w_img, w_eff, sum_w, c, img)

    logits = jnp.transpose(out3, (0, 2, 1)).reshape(batch, attr_num)    # tiny, fused by XLA

    # ---- BatchNorm1d(attr_num) in plain jnp (couples batch items; tiny) ----
    # TODO(synk): PyTorch eval() uses running_mean/var; pass "bn_mean"/"bn_var" in params
    #             for inference parity, otherwise training-mode batch statistics are used.
    if "bn_mean" in params and "bn_var" in params:
        mu_b, var_b = params["bn_mean"], params["bn_var"]
    else:
        mu_b = logits.mean(0, keepdims=True)
        var_b = ((logits - mu_b) ** 2).mean(0, keepdims=True)
    bn_logits = (logits - mu_b) * jax.lax.rsqrt(var_b + BN_EPS) * params["bn_g"] + params["bn_b"]

    return bn_logits, None


# --------------------------------------------------------------------------------------
# Pure-JAX reference for correctness checking
# --------------------------------------------------------------------------------------
def _reference(text, img, p):
    textual = text @ p["w_we"].T + p["b_we"]
    bsz = img.shape[0]
    x = jnp.concatenate([jnp.broadcast_to(textual, (bsz,) + textual.shape), img], axis=1)
    y = jnp.einsum("al,bld->bad", p["w_lin"], x) + p["b_lin"].T[None]
    mu = y.mean(-1, keepdims=True)
    var = ((y - mu) ** 2).mean(-1, keepdims=True)
    yn = (y - mu) * jax.lax.rsqrt(var + LN_EPS) * p["ln_g"] + p["ln_b"]
    logits = jnp.einsum("bad,ad->ba", yn, p["w_attr"]) + p["b_attr"]
    mu_b = logits.mean(0, keepdims=True)
    var_b = ((logits - mu_b) ** 2).mean(0, keepdims=True)
    return (logits - mu_b) * jax.lax.rsqrt(var_b + BN_EPS) * p["bn_g"] + p["bn_b"]


if __name__ == "__main__":
    # small shapes consistent with the module's forward
    batch      = 4
    attr_num   = 8
    dim        = 32    # stands in for 768
    clip_dim   = 16    # stands in for clip_model.visual.output_dim
    img_tokens = 24    # stands in for 257 + args.vis_prompt

    key = jax.random.PRNGKey(0)
    ks = jax.random.split(key, 8)

    text_features       = jax.random.normal(ks[0], (attr_num, clip_dim), jnp.float32)
    clip_image_features = jax.random.normal(ks[1], (batch, img_tokens, dim), jnp.float32)

    fusion_len = attr_num + img_tokens
    params = {
        # word_embed: Linear(clip_dim, dim)
        "w_we":   jax.random.normal(ks[2], (dim, clip_dim), jnp.float32) * 0.05,
        "b_we":   jax.random.normal(ks[3], (1, dim), jnp.float32) * 0.05,
        # linear_layer: Linear(fusion_len, attr_num)
        "w_lin":  jax.random.normal(ks[4], (attr_num, fusion_len), jnp.float32) * 0.05,
        "b_lin":  jax.random.normal(ks[5], (1, attr_num), jnp.float32) * 0.05,
        # vit.norm: LayerNorm(dim)
        "ln_g":   jnp.ones((1, dim), jnp.float32),
        "ln_b":   jnp.zeros((1, dim), jnp.float32),
        # weight_layer[i]: Linear(dim, 1), stacked over attributes
        "w_attr": jax.random.normal(ks[6], (attr_num, dim), jnp.float32) * 0.05,
        "b_attr": jax.random.normal(ks[7], (1, attr_num), jnp.float32) * 0.05,
        # bn: BatchNorm1d(attr_num) affine params
        "bn_g":   jnp.ones((1, attr_num), jnp.float32),
        "bn_b":   jnp.zeros((1, attr_num), jnp.float32),
    }

    # ---- f32 path, tile_b=1 : tight correctness check vs pure-JAX reference ----
    bn_f32, final_similarity = transformer_classifier_forward(
        text_features, clip_image_features, params, tile_b=1, compute_dtype=None)
    bn_f32 = jax.block_until_ready(bn_f32)

    ref = _reference(text_features, clip_image_features, params)
    assert bn_f32.shape == (batch, attr_num)
    assert final_similarity is None
    assert jnp.allclose(bn_f32, ref, atol=1e-3, rtol=1e-3), "f32 mismatch vs reference"

    # ---- bf16 / multi-item-tile path (production default) vs bf16-quantized reference ----
    bn_bf16, _ = transformer_classifier_forward(
        text_features, clip_image_features, params, tile_b=2, compute_dtype=jnp.bfloat16)
    bn_bf16 = jax.block_until_ready(bn_bf16)

    img_q = clip_image_features.astype(jnp.bfloat16).astype(jnp.float32)
    w_img_q = params["w_lin"][:, attr_num:].astype(jnp.bfloat16).astype(jnp.float32)
    params_q = dict(params)
    params_q["w_lin"] = jnp.concatenate([params["w_lin"][:, :attr_num], w_img_q], axis=1)
    ref_q = _reference(text_features, img_q, params_q)

    assert bn_bf16.shape == (batch, attr_num)
    assert bool(jnp.all(jnp.isfinite(bn_bf16)))
    assert jnp.allclose(bn_bf16, ref_q, atol=2e-2, rtol=2e-2), "bf16 mismatch vs quantized reference"

    print("KERNEL_OK")
</pallas_src>

<mosaic_0001>
module attributes {stable_mosaic.version = 11 : i64} {
  func.func @_token_mix_kernel(%arg0: i32, %arg1: memref<8x32xf32, #tpu.memory_space<vmem>>, %arg2: memref<8x24xf32, #tpu.memory_space<vmem>>, %arg3: memref<8x32xf32, #tpu.memory_space<vmem>>, %arg4: memref<8x1xf32, #tpu.memory_space<vmem>>, %arg5: memref<8x1xf32, #tpu.memory_space<vmem>>, %arg6: memref<1x24x32xf32, #tpu.memory_space<vmem>>, %arg7: memref<1x8x1xf32, #tpu.memory_space<vmem>>) attributes {dimension_semantics = [#tpu.dimension_semantics<parallel>], iteration_bounds = array<i64: 4>, scalar_prefetch = 0 : i64, scratch_operands = 0 : i64, tpu.core_type = #tpu.core_type<tc>, window_params = [{pipeline_mode = #tpu.pipeline_mode<synchronous>, transform_indices = @transform_0, window_bounds = array<i64: 8, 32>}, {pipeline_mode = #tpu.pipeline_mode<synchronous>, transform_indices = @transform_1, window_bounds = array<i64: 8, 24>}, {pipeline_mode = #tpu.pipeline_mode<synchronous>, transform_indices = @transform_2, window_bounds = array<i64: 8, 32>}, {pipeline_mode = #tpu.pipeline_mode<synchronous>, transform_indices = @transform_3, window_bounds = array<i64: 8, 1>}, {pipeline_mode = #tpu.pipeline_mode<synchronous>, transform_indices = @transform_4, window_bounds = array<i64: 8, 1>}, {transform_indices = @transform_5, window_bounds = array<i64: 1, 24, 32>}, {transform_indices = @transform_6, window_bounds = array<i64: 1, 8, 1>}]} {
    %c0 = arith.constant 0 : index
    %c0_0 = arith.constant 0 : index
    %0 = vector.load %arg1[%c0, %c0_0] : memref<8x32xf32, #tpu.memory_space<vmem>>, vector<8x32xf32>
    %c0_1 = arith.constant 0 : index
    %c0_2 = arith.constant 0 : index
    %1 = vector.load %arg2[%c0_1, %c0_2] : memref<8x24xf32, #tpu.memory_space<vmem>>, vector<8x24xf32>
    %c0_3 = arith.constant 0 : index
    %c0_4 = arith.constant 0 : index
    %2 = vector.load %arg3[%c0_3, %c0_4] : memref<8x32xf32, #tpu.memory_space<vmem>>, vector<8x32xf32>
    %c0_5 = arith.constant 0 : index
    %c0_6 = arith.constant 0 : index
    %3 = vector.load %arg4[%c0_5, %c0_6] : memref<8x1xf32, #tpu.memory_space<vmem>>, vector<8x1xf32>
    %c0_7 = arith.constant 0 : index
    %c0_8 = arith.constant 0 : index
    %4 = vector.load %arg5[%c0_7, %c0_8] : memref<8x1xf32, #tpu.memory_space<vmem>>, vector<8x1xf32>
    %c0_9 = arith.constant 0 : index
    %c0_10 = arith.constant 0 : index
    %c0_11 = arith.constant 0 : index
    %5 = vector.load %arg6[%c0_9, %c0_10, %c0_11] : memref<1x24x32xf32, #tpu.memory_space<vmem>>, vector<1x24x32xf32>
    %6 = vector.shape_cast %5 : vector<1x24x32xf32> to vector<24x32xf32>
    %cst = arith.constant dense<0.000000e+00> : vector<8x32xf32>
    %7 = tpu.matmul %1, %6, %cst {dimension_numbers = #tpu.dot_dimension_numbers<[1], [0], [0], [1], [0, 0, 1, 1], [], []>} : vector<8x24xf32>, vector<24x32xf32>, vector<8x32xf32> -> vector<8x32xf32>
    %8 = arith.addf %7, %0 : vector<8x32xf32>
    %cst_12 = arith.constant dense<0.000000e+00> : vector<8xf32>
    %9 = vector.multi_reduction <add>, %8, %cst_12 [1] : vector<8x32xf32> to vector<8xf32>
    %10 = vector.shape_cast %9 : vector<8xf32> to vector<8x1xf32>
    %11 = arith.mulf %8, %8 : vector<8x32xf32>
    %cst_13 = arith.constant dense<0.000000e+00> : vector<8xf32>
    %12 = vector.multi_reduction <add>, %11, %cst_13 [1] : vector<8x32xf32> to vector<8xf32>
    %13 = vector.shape_cast %12 : vector<8xf32> to vector<8x1xf32>
    %14 = arith.mulf %8, %2 : vector<8x32xf32>
    %cst_14 = arith.constant dense<0.000000e+00> : vector<8xf32>
    %15 = vector.multi_reduction <add>, %14, %cst_14 [1] : vector<8x32xf32> to vector<8xf32>
    %16 = vector.shape_cast %15 : vector<8xf32> to vector<8x1xf32>
    %cst_15 = arith.constant 3.125000e-02 : f32
    %17 = vector.broadcast %cst_15 : f32 to vector<8x1xf32>
    %18 = arith.mulf %10, %17 : vector<8x1xf32>
    %cst_16 = arith.constant 3.125000e-02 : f32
    %19 = vector.broadcast %cst_16 : f32 to vector<8x1xf32>
    %20 = arith.mulf %13, %19 : vector<8x1xf32>
    %21 = arith.mulf %18, %18 : vector<8x1xf32>
    %22 = arith.subf %20, %21 : vector<8x1xf32>
    %cst_17 = arith.constant 9.99999997E-7 : f32
    %23 = vector.broadcast %cst_17 : f32 to vector<8x1xf32>
    %24 = arith.addf %22, %23 : vector<8x1xf32>
    %25 = math.rsqrt %24 : vector<8x1xf32>
    %26 = arith.mulf %18, %3 : vector<8x1xf32>
    %27 = arith.subf %16, %26 : vector<8x1xf32>
    %28 = arith.mulf %25, %27 : vector<8x1xf32>
    %29 = arith.addf %28, %4 : vector<8x1xf32>
    %c0_18 = arith.constant 0 : index
    %c0_19 = arith.constant 0 : index
    %c0_20 = arith.constant 0 : index
    %30 = vector.load %arg7[%c0_18, %c0_19, %c0_20] : memref<1x8x1xf32, #tpu.memory_space<vmem>>, vector<1x8x1xf32>
    %31 = vector.shape_cast %30 : vector<1x8x1xf32> to vector<8x1xf32>
    %32 = vector.shape_cast %29 : vector<8x1xf32> to vector<1x8x1xf32>
    tpu.vector_store %arg7[%c0_18, %c0_19, %c0_20], %32 {strides = array<i32>} : memref<1x8x1xf32, #tpu.memory_space<vmem>>, vector<1x8x1xf32>,
    return
  }
  func.func @transform_0(%arg0: i32) -> (i32, i32) {
    %c0_i32 = arith.constant 0 : i32
    %c0_i32_0 = arith.constant 0 : i32
    %c0_i32_1 = arith.constant 0 : i32
    return %c0_i32, %c0_i32_0 : i32, i32
  }
  func.func @transform_1(%arg0: i32) -> (i32, i32) {
    %c0_i32 = arith.constant 0 : i32
    %c0_i32_0 = arith.constant 0 : i32
    %c0_i32_1 = arith.constant 0 : i32
    return %c0_i32, %c0_i32_0 : i32, i32
  }
  func.func @transform_2(%arg0: i32) -> (i32, i32) {
    %c0_i32 = arith.constant 0 : i32
    %c0_i32_0 = arith.constant 0 : i32
    %c0_i32_1 = arith.constant 0 : i32
    return %c0_i32, %c0_i32_0 : i32, i32
  }
  func.func @transform_3(%arg0: i32) -> (i32, i32) {
    %c0_i32 = arith.constant 0 : i32
    %c0_i32_0 = arith.constant 0 : i32
    %c0_i32_1 = arith.constant 0 : i32
    return %c0_i32, %c0_i32_0 : i32, i32
  }
  func.func @transform_4(%arg0: i32) -> (i32, i32) {
    %c0_i32 = arith.constant 0 : i32
    %c0_i32_0 = arith.constant 0 : i32
    %c0_i32_1 = arith.constant 0 : i32
    return %c0_i32, %c0_i32_0 : i32, i32
  }
  func.func @transform_5(%arg0: i32) -> (i32, i32, i32) {
    %c0_i32 = arith.constant 0 : i32
    %c0_i32_0 = arith.constant 0 : i32
    %c0_i32_1 = arith.constant 0 : i32
    return %arg0, %c0_i32, %c0_i32_0 : i32, i32, i32
  }
  func.func @transform_6(%arg0: i32) -> (i32, i32, i32) {
    %c0_i32 = arith.constant 0 : i32
    %c0_i32_0 = arith.constant 0 : i32
    %c0_i32_1 = arith.constant 0 : i32
    return %arg0, %c0_i32, %c0_i32_0 : i32, i32, i32
  }
}

</mosaic_0001>

<bundles_post_ra>
// kernel: tpu_custom_call.1
= control target key start
LH: loop header
LB: loop body
LE: loop exit
PB: predicated region body
PF: predicated region fallthrough
CT: control target
= control target key end

     0   :  { %11 = vsyncpa [#allocation3], 0  ;;  %s756_s0 = inlined_call_operand.vmem [shape: f32[8,32], index: 0, kind: input, shape index: {}]   ;;  %s757_s1 = inlined_call_operand.vmem [shape: f32[8,24], index: 1, kind: input, shape index: {}]   ;;  %s758_s2 = inlined_call_operand.hbm [shape: f32[8,32], index: 2, kind: input, shape index: {}]   ;;  %s759_s3 = inlined_call_operand.vmem [shape: f32[8,1], index: 3, kind: input, shape index: {}]   ;;  %s760_s4 = inlined_call_operand.vmem [shape: f32[8,1], index: 4, kind: input, shape index: {}]   ;;  %s761_s5 = inlined_call_operand.hbm [shape: f32[4,24,32], index: 5, kind: input, shape index: {}]   ;;  %s762_s6 = inlined_call_operand.vmem [shape: f32[4,8,1], index: 6, kind: output, shape index: {}]  }
   0x1   :  { %12 = vsyncpa [#allocation5], 0 }
   0x2   :  { %14 = vsyncpa [#allocation5 + $0x1], 0  ;;  %s635_s21 = smov 0   ;;  %s637_s22 = smov 0  }
   0x3   :  { %s639_s23 = smov 0   ;;  %s641_s24 = smov 0  }
   0x4 LB: > { %s654_s25 = sadd.s32 4294967295, %s595_s24   ;;  %s657_s26 = sadd.s32 1, %s595_s24   ;;  %s595_s24 = sphi %s641_s24, %s770_s24   ;;  %s591_s23 = sphi %s639_s23, %s769_s23   ;;  %s587_s22 = sphi %s637_s22, %s768_s22   ;;  %s583_s21 = sphi %s635_s21, %s767_s21  }
   0x5   : > { %s129_s27 = ssub.s32 %s595_s24, %s657_s26  ;;  %s132_s28 = sadd.s32 1, %s591_s23 }
   0x6   : > { %p130_p0 = scmp.eq.s32.totalorder %s129_s27, 0  ;;  %p139_p1 = scmp.ne.s32.totalorder %s591_s23, %s587_s22 }
   0x7   : > { %p140_p2 = scmp.eq.s32.totalorder %s595_s24, 0  ;;  %p145_p3 = scmp.ne.s32.totalorder %s587_s22, %s583_s21 }
   0x8   : > { %s667_s29 = scalar_select %p130_p0, %s591_s23, %s132_s28  }
   0x9   : > { %p669_p4 = por %p140_p2, %p139_p1  ;;  %p146_p5 = scmp.eq.s32.totalorder %s654_s25, 0 }
   0xa   : > { %p430_p6 = scmp.ge.s32.totalorder %s595_s24, 1  ;;  %p182_p7 = scmp.lt.s32.totalorder %s595_s24, 5 }
   0xb   : > { %p678_p8 = por %p146_p5, %p145_p3  ;;  %s200_s11 = sshll.u32 %s758_s2, 4  ;;  %s201_s11 = int_to_ptr.hbm [resolvable:$true] %s200_s11 }
   0xc   : > { %p682_p9 = pnand %p430_p6, %p182_p7  ;;  %s597_s12 = smov [#allocation2]  }
   0xd   : > { %s202_s13 = sshll.u32 %s597_s12, 4  ;;  %p458_p12 = scmp.lt.s32.totalorder %s595_s24, 4  ;;  %s203_s13 = int_to_ptr.vmem [resolvable:$true] %s202_s13 }
   0xe   : > { %p449_p10 = pneg %p682_p9  ;;  %s219_s14 = sand.u32 1, %s591_s23  }
   0xf   : > { %s441_s15 = smul.u32 24, %s595_s24  ;;  %p698_p13 = pnand %p458_p12, %p669_p4 }
  0x10   : > { %p450_p11 = pnand %p449_p10, %p146_p5  ;;  %s440_s17 = smul.u32 24, %s219_s14 }
  0x11   : > { %s228_s20 = scalar_lea.hbm %s761_s5, %s441_s15  ;;  %s220_s9 = scalar_lea.sflag [#allocation5], %s219_s14 }
  0x12   : > { %452 = dma.hbm_to_vmem [thread:$0]  (!%p450_p11), %s201_s11, 128, %s203_s13, [#allocation3]  }
  0x13   : > { %s229_s21 = sshll.u32 %s228_s20, 4  ;;  %s223_s27 = scalar_lea.vmem [#allocation4], %s440_s17  ;;  %s230_s21 = int_to_ptr.hbm [resolvable:$true] %s229_s21 }
  0x14   : > { %s231_s28 = sshll.u32 %s223_s27, 4  ;;  %s527_s10 = sshra.s32 %s230_s21, 4  ;;  %s232_s28 = int_to_ptr.vmem [resolvable:$true] %s231_s28  ;;  %s528_s10 = int_to_ptr.hbm [resolvable:$true] %s527_s10 }
  0x15   : > { %s529_s24 = scalar_lea.hbm %s528_s10, 24  ;;  %p531_p1 = pneg %p698_p13 }
  0x16   : > { %p530_p0 = scmp.ne.s32.totalorder %s528_s10, %s529_s24  ;;  %s534_s12 = scalar_lea.hbm %s761_s5, 96 }
  0x17   : > { %p535_p4 = scmp.lt.s32.totalorder %s528_s10, %s761_s5  ;;  %p536_p6 = scmp.lt.s32.totalorder %s534_s12, %s529_s24 }
  0x18   : > { %p532_p2 = pnand %p531_p1, %p530_p0 }
  0x19   : > { %p537_p7 = por %p536_p6, %p535_p4 }
  0x1a   : > { %p533_p3 = pneg %p532_p2 }
  0x1c   : > { %p538_p10 = pnand %p537_p7, %p533_p3 }
  0x1e   : > { %541 = shalt.err (!%p538_p10)
}
  0x1f   : > { %s598_s14 = smov 128   ;;  %s599_s17 = smov 8  }
  0x20   : > { %456 = dma.hbm_to_vmem [thread:$0]  (!%p698_p13), %s230_s21, 384, %s232_s28, %s220_s9, %s598_s14, %s598_s14, %s599_s17  }
  0x21   : > { %243 = sbr.rel (%p682_p9) target bundleno = 332 (0x14c), region = 44 }
  0x26   : > { %574 = dma.done.wait (%p146_p5), [#allocation3], 128  }
  0x27   : > { %576 = vsyncadd (%p146_p5), [#allocation3], 4294967168  ;;  %s250_s18 = sand.u32 1, %s587_s22  }
  0x28   : > { %s442_s19 = smul.u32 24, %s250_s18  ;;  %s251_s20 = scalar_lea.sflag [#allocation5], %s250_s18 }
  0x2a   : > { %s254_s27 = scalar_lea.vmem [#allocation4], %s442_s19 }
  0x2b   : > { %578 = dma.done.wait (%p678_p8), %s251_s20, 384  }
  0x2c   : > { %580 = vsyncadd (%p678_p8), %s251_s20, 4294966912  ;;  %v294_v0 = vld [vmem:[%s254_s27 + $0x10] sm:$0xff]  ;;  %v293_v1 = vld [vmem:[%s254_s27 + $0x8] sm:$0xff]  ;;  %vm295_vm0 = vcmask 195584   ;;  %vm319_vm1 = vcmask 261120   ;;  %p283_p5 = scmp.lt.s32.totalorder %s654_s25, 3 }
  0x2d   : > { %312 = vmatpush.msra.mxu0 %v294_v0  ;;  %v292_v2 = vld [vmem:[%s254_s27] sm:$0xff]  ;;  %vm350_vm5 = vcmask 7168  }
  0x2e   : > { %v288_v3 = vld [vmem:[%s757_s1] sm:$0xff]  ;;  %s772_s25 = smov (!%p283_p5, %s654_s25), 3 }
  0x2f   : > { %313 = vmatpush.msra.mxu0 %v293_v1  ;;  %v287_v4 = vld [vmem:[%s756_s0] sm:$0xff]  ;;  %s436_s10 = sshll.u32 %s772_s25, 3 }
  0x30   : > { %v289_v6 = vld [vmem:[#allocation2] sm:$0xff]  ;;  %s286_s13 = scalar_lea.vmem %s762_s6, %s436_s10 }
  0x31   : > { %314 = vmatpush.msra.mxu0 %v292_v2  ;;  %v290_v22 = vld [vmem:[%s759_s3] sm:$0xff] }
  0x32   : > { %437 = vmatmul.msk.f32.vlgmr.msra.gmra.mxu0 %vm295_vm0, %v288_v3  ;;  %v291_v30 = vld [vmem:[%s760_s4] sm:$0xff] }
  0xaf   : > { %v316_v5 = vpop.f32.mrf.mxu0 }
  0xb0   : > { %v317_v7 = vadd.f32 %v316_v5, %v287_v4 }
  0xb2   : > { %v320_v8 = vsel %vm319_vm1, %v317_v7, 0.0  ;;  %v327_v9 = vmul.f32 %v317_v7, %v289_v6  ;;  %v323_v11 = vmul.f32 %v317_v7, %v317_v7 }
  0xb3   : > { %321 = vadd.xlane.f32.xlu0 %v320_v8 }
  0xb4   : > { %v328_v10 = vsel %vm319_vm1, %v327_v9, 0.0  ;;  %v324_v12 = vsel %vm319_vm1, %v323_v11, 0.0 }
  0xb5   : > { %329 = vadd.xlane.f32.xlu1 %v328_v10 }
  0xbb   : > { %325 = vadd.xlane.f32.xlu0 %v324_v12 }
 0x126   : > { %v322_v13 = vpop.xlane.xlu0 %321 }
 0x127   : > { %v331_v14 = vmul.f32 0.03125, %v322_v13 }
 0x128   : > { %v330_v27 = vpop.xlane.xlu1 %329 }
 0x129   : > { %v333_v16 = vmul.f32 %v331_v14, %v331_v14  ;;  %v346_v25 = vmul.f32 %v331_v14, %v290_v22 }
 0x12b   : > { %v347_v29 = vsub.f32 %v330_v27, %v346_v25 }
 0x12e   : > { %v326_v15 = vpop.xlane.xlu0 %325 }
 0x12f   : > { %v332_v17 = vmul.f32 0.03125, %v326_v15 }
 0x131   : > { %v334_v18 = vsub.f32 %v332_v17, %v333_v16 }
 0x133   : > { %v335_v19 = vadd.f32 1e-06, %v334_v18 }
 0x135   : > { %495 = vrsqrt.f32 %v335_v19  ;;  %vm342_vm3 = vweird.f32 %v335_v19 }
 0x13b   : > { %v496_v20 = vpop.eup %495 }
 0x13c   : > { %v337_v21 = vmul.f32 %v496_v20, %v335_v19  ;;  %vm343_vm2 = vweird.f32 %v496_v20 }
 0x13d   : > { %vm344_vm4 = vmor %vm342_vm3, %vm343_vm2 }
 0x13e   : > { %v338_v23 = vmul.f32 %v496_v20, %v337_v21 }
 0x140   : > { %v339_v24 = vmul.f32 0.5, %v338_v23 }
 0x142   : > { %v340_v26 = vsub.f32 1.5, %v339_v24 }
 0x144   : > { %v341_v28 = vmul.f32 %v496_v20, %v340_v26 }
 0x146   : > { %v345_v31 = vsel %vm344_vm4, %v496_v20, %v341_v28 }
 0x147   : > { %v348_v32 = vmul.f32 %v347_v29, %v345_v31 }
 0x149   : > { %v349_v33 = vadd.f32 %v348_v32, %v291_v30 }
 0x14b   : > { %351 = vst.msk [vmem:[%s286_s13] sm:$0xff] %vm350_vm5, %v349_v33 }
 0x14c PF: > { %p17_p8 = scmp.ge.s32.totalorder %s657_s26, 6   ;;  %s767_s21 = smov %s587_s22 }
 0x14d   : > { %s768_s22 = smov %s591_s23  ;;  %s769_s23 = smov %s667_s29 }
 0x14e   : > { %s770_s24 = smov %s657_s26  ;;  %19 = sbr.rel (!%p17_p8) target bundleno = 4 (0x4), region = 89 }
 0x153   :  { %371 = vsyncpa [#allocation3], 1 }
 0x154   :  { %373 = vsyncpa [#allocation3 + $0x1], 1 }
 0x155   :  { %374 = vsyncpa [#allocation5], 1 }
 0x156   :  { %376 = vsyncpa [#allocation5 + $0x1], 1 }

</bundles_post_ra>
